<compile_context>
chip_gen: v5e
topology: v5e:2x2
jax: 0.10.0
libtpu: 0.0.40
codegen_flags: <defaults>
</compile_context>

<pallas_src>
from functools import partial

import numpy as np
import jax
import jax.numpy as jnp
from jax.experimental import pallas as pl
from jax.experimental.pallas import tpu as pltpu

_VMEM_BUDGET = 32 * 1024 * 1024  # safe scoped-VMEM budget on v5e/v6e (128 MiB) and v7x (64 MiB)


def _build_shift_reduction_matrix(T, M, S):
    """Constant G such that  mse * T = X @ G  for the lane-packed X built in the kernel.

    X column layout (width padded to a multiple of 128):
      [0, T)                 : P^2 + Y^2            (contributes sum(P^2) + total sum(Y^2) to every shift)
      [(k+1)T, (k+2)T)       : P * ypad[:, k:k+T]   (cross-correlation term of shift k)
      [(S+1)T, (S+1)T + M)   : Y[:, :M]^2           (head edge, window-sum correction)
      [(S+1)T+M, (S+1)T+2M)  : Y[:, T-M:]^2         (tail edge, window-sum correction)
      remainder              : zero padding
    """
    wx = (S + 1) * T + 2 * M
    wx_pad = ((wx + 127) // 128) * 128
    g = np.zeros((wx_pad, S), np.float32)
    g[:T, :] = 1.0
    for k in range(S):
        g[(k + 1) * T:(k + 2) * T, k] = -2.0
    base = (S + 1) * T
    for k in range(S):
        s = k - M
        if s > 0:       # positive shift: window excludes the first s samples of y_true
            g[base:base + s, k] = -1.0
        elif s < 0:     # negative shift: window excludes the last (-s) samples of y_true
            g[base + M + k:base + 2 * M, k] = -1.0
    return jnp.asarray(g)


def _talos_mse_kernel(y_pred_ref, y_true_ref, g_ref, mse_ref, ypad_ref, x_ref, *, T, M, S):
    """One batch tile: build padded GT + packed shift tensor in VMEM, reduce with one MXU matmul.

    y_pred_ref : (Bt, T)         input dtype, VMEM
    y_true_ref : (Bt, T)         input dtype, VMEM
    g_ref      : (Wx_pad, S)     f32, VMEM (constant, same block every grid step)
    mse_ref    : (Bt, S)         f32, VMEM output
    ypad_ref   : (Bt, T + 2M)    f32, VMEM scratch (zero-padded ground truth)
    x_ref      : (Bt, Wx_pad)    f32, VMEM scratch (lane-packed per-shift terms)
    """
    bt = y_pred_ref.shape[0]
    inv_t = 1.0 / T

    # Upcast in-kernel so bf16 inputs only pay bf16 HBM traffic (f32 accumulation below).
    p = y_pred_ref[...].astype(jnp.float32)
    y = y_true_ref[...].astype(jnp.float32)

    # Zero-padded ground truth lives in VMEM scratch (no wrapper-side jnp.pad HBM pass).
    if M > 0:
        edge_zeros = jnp.zeros((bt, M), jnp.float32)
        ypad_ref[:, :M] = edge_zeros
        ypad_ref[:, M + T:] = edge_zeros
    ypad_ref[:, M:M + T] = y

    ysq = y * y

    # Column block 0: P^2 + Y^2 (all-ones rows of G turn this into sum(P^2) + total sum(Y^2)).
    x_ref[:, 0:T] = p * p + ysq

    # Column blocks 1..S: one VPU multiply per shift (cross-correlation terms).
    # NOTE: for T a multiple of 128 these stores are lane-aligned; the ypad slices are
    # unaligned lane reads (XLU rotates) — acceptable for small num_shifts.
    # TODO(synk): for large max_shift, pre-rotate ypad once (or lay time on sublanes)
    #             to cut per-shift XLU rotate traffic further.
    for k in range(S):
        x_ref[:, (k + 1) * T:(k + 2) * T] = p * ypad_ref[:, k:k + T]

    # Edge blocks + zero the lane padding so the matmul contraction sees exact zeros.
    base = (S + 1) * T
    pad_cols = x_ref.shape[1] - base
    if pad_cols > 0:
        x_ref[:, base:] = jnp.zeros((bt, pad_cols), jnp.float32)
    if M > 0:
        x_ref[:, base:base + M] = ysq[:, :M]
        x_ref[:, base + M:base + 2 * M] = ysq[:, T - M:]

    # Single MXU matmul absorbs every per-shift time reduction; output is already (Bt, S).
    mse_ref[...] = jnp.dot(x_ref[...], g_ref[...],
                           preferred_element_type=jnp.float32) * inv_t


def _vmem_bytes_estimate(bt, T, M, S, wx_pad, in_itemsize):
    dbl_inputs = 2 * 2 * bt * T * in_itemsize          # y_pred + y_true, double-buffered
    g_bytes = 2 * wx_pad * S * 4                       # constant G (conservatively x2)
    out_bytes = 2 * bt * S * 4
    scratch = bt * (T + 2 * M) * 4 + bt * wx_pad * 4   # ypad + packed X
    return dbl_inputs + g_bytes + out_bytes + scratch


def _pick_batch_tile(B, T, M, S, wx_pad, in_itemsize, budget):
    """Largest multiple-of-8 divisor of B that fits the VMEM budget, preferring >=2 grid steps."""
    cands = sorted({d for d in range(8, B + 1, 8) if B % d == 0}, reverse=True)
    for want_grid in (2, 1):
        for d in cands:
            if B // d >= want_grid and _vmem_bytes_estimate(d, T, M, S, wx_pad, in_itemsize) <= budget:
                return d
    return B  # tiny / awkward batch: single full-batch block (block == full dim is always legal)


def talos_loss(y_pred, y_true, theta_batch, max_shift_frames, validation=False):
    """TALOS loss. Returns (loss, mse_per_shift[batch, num_shifts])."""
    B, T = y_pred.shape
    M = int(max_shift_frames)
    S = 2 * M + 1
    assert y_true.shape == (B, T)
    assert theta_batch.shape == (B, S)

    g = _build_shift_reduction_matrix(T, M, S)          # (Wx_pad, S) f32 constant
    wx_pad = g.shape[0]

    in_itemsize = max(y_pred.dtype.itemsize, y_true.dtype.itemsize)
    bt = _pick_batch_tile(B, T, M, S, wx_pad, in_itemsize, _VMEM_BUDGET)
    grid = (B // bt,)

    kernel = partial(_talos_mse_kernel, T=T, M=M, S=S)
    flops = 2 * B * wx_pad * S + B * T * (2 * S + 4)
    bytes_accessed = (B * T * (y_pred.dtype.itemsize + y_true.dtype.itemsize)
                      + wx_pad * S * 4 + B * S * 4)

    mse = pl.pallas_call(
        kernel,
        out_shape=jax.ShapeDtypeStruct((B, S), jnp.float32),
        grid=grid,
        in_specs=[
            pl.BlockSpec((bt, T), lambda i: (i, 0)),
            pl.BlockSpec((bt, T), lambda i: (i, 0)),
            pl.BlockSpec((wx_pad, S), lambda i: (0, 0)),   # constant block, reused across steps
        ],
        out_specs=pl.BlockSpec((bt, S), lambda i: (i, 0)),
        scratch_shapes=[
            pltpu.VMEM((bt, T + 2 * M), jnp.float32),
            pltpu.VMEM((bt, wx_pad), jnp.float32),
        ],
        compiler_params=pltpu.CompilerParams(
            dimension_semantics=("parallel",),
            vmem_limit_bytes=_VMEM_BUDGET,
        ),
        cost_estimate=pl.CostEstimate(
            flops=int(flops), transcendentals=0, bytes_accessed=int(bytes_accessed)),
    )(y_pred, y_true, g)

    if validation:
        # Tiny (B, S) reduction — kept as glue (mirrors torch.min(mse, dim=0).values.mean()).
        return jnp.mean(jnp.min(mse, axis=1)), mse

    # Training path: per-sample softmax over shifts, weighted sum, mean over batch.
    # Kept outside the kernel (tiny (B, S) math) so the batch grid axis stays fully parallel.
    p = jax.nn.softmax(theta_batch.astype(jnp.float32), axis=1)
    loss = jnp.sum(mse * p) / B
    return loss, mse


if __name__ == "__main__":
    key = jax.random.PRNGKey(0)

    # Module config (small, deterministic).
    sampling_rate = 8
    max_shift = sampling_rate // 2               # 4 -> num_shifts = 9
    num_shifts = 2 * max_shift + 1
    participants = ["s001", "s002", "s003", "s004"]
    # Deterministic parameter init, exactly as TALOSLoss.__init__: theta_s[p] = ones(S)/S
    theta_s = {p: jnp.ones((num_shifts,), jnp.float32) / num_shifts for p in participants}

    B, T = 16, 128
    k1, k2 = jax.random.split(key)
    y_pred = jax.random.normal(k1, (B, T), dtype=jnp.float32)
    y_true = jax.random.normal(k2, (B, T), dtype=jnp.float32)

    # TODO(synk): string-keyed ParameterDict lookup (participant_id[4:8]) is host-side glue;
    #             it gathers the per-sample logits into theta_batch before the kernel call.
    participant_ids = [f"vid_s{(i % len(participants)) + 1:03d}_x" for i in range(B)]
    theta_batch = jnp.stack([theta_s[pid[4:8]] for pid in participant_ids], axis=0)  # (B, S)

    # Run the Pallas kernel (training path).
    loss, mse = talos_loss(y_pred, y_true, theta_batch, max_shift)
    loss = jax.block_until_ready(loss)

    # Pure-JAX reference (mirrors the PyTorch forward).
    y_pad_ref = jnp.pad(y_true, ((0, 0), (max_shift, max_shift)))
    shifted = jnp.stack([y_pad_ref[:, k:k + T] for k in range(num_shifts)], axis=0)  # (S,B,T)
    mse_ref = jnp.mean((y_pred[None] - shifted) ** 2, axis=-1)                       # (S,B)
    p_ref = jax.nn.softmax(theta_batch, axis=1)                                      # (B,S)
    loss_ref = jnp.sum(mse_ref.T * p_ref) / B
    val_ref = jnp.mean(jnp.min(mse_ref, axis=0))

    assert jnp.allclose(mse, mse_ref.T, atol=1e-4, rtol=1e-4), "mse_per_shift mismatch"
    assert jnp.allclose(loss, loss_ref, atol=1e-4, rtol=1e-4), (float(loss), float(loss_ref))

    # Validation path.
    val_loss, _ = talos_loss(y_pred, y_true, theta_batch, max_shift, validation=True)
    val_loss = jax.block_until_ready(val_loss)
    assert jnp.allclose(val_loss, val_ref, atol=1e-4, rtol=1e-4), (float(val_loss), float(val_ref))

    print("KERNEL_OK")
</pallas_src>

<mosaic_0001>
module attributes {stable_mosaic.version = 11 : i64} {
  func.func @_talos_mse_kernel(%arg0: i32, %arg1: memref<8x128xf32, #tpu.memory_space<vmem>>, %arg2: memref<8x128xf32, #tpu.memory_space<vmem>>, %arg3: memref<1408x9xf32, #tpu.memory_space<vmem>>, %arg4: memref<8x9xf32, #tpu.memory_space<vmem>>, %arg5: memref<8x136xf32, #tpu.memory_space<vmem>>, %arg6: memref<8x1408xf32, #tpu.memory_space<vmem>>) attributes {dimension_semantics = [#tpu.dimension_semantics<parallel>], iteration_bounds = array<i64: 2>, scalar_prefetch = 0 : i64, scratch_operands = 2 : i64, tpu.core_type = #tpu.core_type<tc>, window_params = [{transform_indices = @transform_0, window_bounds = array<i64: 8, 128>}, {transform_indices = @transform_1, window_bounds = array<i64: 8, 128>}, {pipeline_mode = #tpu.pipeline_mode<synchronous>, transform_indices = @transform_2, window_bounds = array<i64: 1408, 9>}, {transform_indices = @transform_3, window_bounds = array<i64: 8, 9>}]} {
    %c0 = arith.constant 0 : index
    %c0_0 = arith.constant 0 : index
    %0 = vector.load %arg1[%c0, %c0_0] : memref<8x128xf32, #tpu.memory_space<vmem>>, vector<8x128xf32>
    %c0_1 = arith.constant 0 : index
    %c0_2 = arith.constant 0 : index
    %1 = vector.load %arg2[%c0_1, %c0_2] : memref<8x128xf32, #tpu.memory_space<vmem>>, vector<8x128xf32>
    %cst = arith.constant 0.000000e+00 : f32
    %2 = vector.broadcast %cst : f32 to vector<8x4xf32>
    %c0_3 = arith.constant 0 : index
    %c0_4 = arith.constant 0 : index
    %3 = vector.load %arg5[%c0_3, %c0_4] : memref<8x136xf32, #tpu.memory_space<vmem>>, vector<8x4xf32>
    tpu.vector_store %arg5[%c0_3, %c0_4], %2 {strides = array<i32>} : memref<8x136xf32, #tpu.memory_space<vmem>>, vector<8x4xf32>,
    %c0_5 = arith.constant 0 : index
    %c132 = arith.constant 132 : index
    %4 = vector.load %arg5[%c0_5, %c132] : memref<8x136xf32, #tpu.memory_space<vmem>>, vector<8x4xf32>
    tpu.vector_store %arg5[%c0_5, %c132], %2 {strides = array<i32>} : memref<8x136xf32, #tpu.memory_space<vmem>>, vector<8x4xf32>,
    %c0_6 = arith.constant 0 : index
    %c4 = arith.constant 4 : index
    %5 = vector.load %arg5[%c0_6, %c4] : memref<8x136xf32, #tpu.memory_space<vmem>>, vector<8x128xf32>
    tpu.vector_store %arg5[%c0_6, %c4], %1 {strides = array<i32>} : memref<8x136xf32, #tpu.memory_space<vmem>>, vector<8x128xf32>,
    %6 = arith.mulf %1, %1 : vector<8x128xf32>
    %7 = arith.mulf %0, %0 : vector<8x128xf32>
    %8 = arith.addf %7, %6 : vector<8x128xf32>
    %c0_7 = arith.constant 0 : index
    %c0_8 = arith.constant 0 : index
    %9 = vector.load %arg6[%c0_7, %c0_8] : memref<8x1408xf32, #tpu.memory_space<vmem>>, vector<8x128xf32>
    tpu.vector_store %arg6[%c0_7, %c0_8], %8 {strides = array<i32>} : memref<8x1408xf32, #tpu.memory_space<vmem>>, vector<8x128xf32>,
    %c0_9 = arith.constant 0 : index
    %c0_10 = arith.constant 0 : index
    %10 = vector.load %arg5[%c0_9, %c0_10] : memref<8x136xf32, #tpu.memory_space<vmem>>, vector<8x128xf32>
    %11 = arith.mulf %0, %10 : vector<8x128xf32>
    %c0_11 = arith.constant 0 : index
    %c128 = arith.constant 128 : index
    %12 = vector.load %arg6[%c0_11, %c128] : memref<8x1408xf32, #tpu.memory_space<vmem>>, vector<8x128xf32>
    tpu.vector_store %arg6[%c0_11, %c128], %11 {strides = array<i32>} : memref<8x1408xf32, #tpu.memory_space<vmem>>, vector<8x128xf32>,
    %c0_12 = arith.constant 0 : index
    %c1 = arith.constant 1 : index
    %13 = vector.load %arg5[%c0_12, %c1] : memref<8x136xf32, #tpu.memory_space<vmem>>, vector<8x128xf32>
    %14 = arith.mulf %0, %13 : vector<8x128xf32>
    %c0_13 = arith.constant 0 : index
    %c256 = arith.constant 256 : index
    %15 = vector.load %arg6[%c0_13, %c256] : memref<8x1408xf32, #tpu.memory_space<vmem>>, vector<8x128xf32>
    tpu.vector_store %arg6[%c0_13, %c256], %14 {strides = array<i32>} : memref<8x1408xf32, #tpu.memory_space<vmem>>, vector<8x128xf32>,
    %c0_14 = arith.constant 0 : index
    %c2 = arith.constant 2 : index
    %16 = vector.load %arg5[%c0_14, %c2] : memref<8x136xf32, #tpu.memory_space<vmem>>, vector<8x128xf32>
    %17 = arith.mulf %0, %16 : vector<8x128xf32>
    %c0_15 = arith.constant 0 : index
    %c384 = arith.constant 384 : index
    %18 = vector.load %arg6[%c0_15, %c384] : memref<8x1408xf32, #tpu.memory_space<vmem>>, vector<8x128xf32>
    tpu.vector_store %arg6[%c0_15, %c384], %17 {strides = array<i32>} : memref<8x1408xf32, #tpu.memory_space<vmem>>, vector<8x128xf32>,
    %c0_16 = arith.constant 0 : index
    %c3 = arith.constant 3 : index
    %19 = vector.load %arg5[%c0_16, %c3] : memref<8x136xf32, #tpu.memory_space<vmem>>, vector<8x128xf32>
    %20 = arith.mulf %0, %19 : vector<8x128xf32>
    %c0_17 = arith.constant 0 : index
    %c512 = arith.constant 512 : index
    %21 = vector.load %arg6[%c0_17, %c512] : memref<8x1408xf32, #tpu.memory_space<vmem>>, vector<8x128xf32>
    tpu.vector_store %arg6[%c0_17, %c512], %20 {strides = array<i32>} : memref<8x1408xf32, #tpu.memory_space<vmem>>, vector<8x128xf32>,
    %c0_18 = arith.constant 0 : index
    %c4_19 = arith.constant 4 : index
    %22 = vector.load %arg5[%c0_18, %c4_19] : memref<8x136xf32, #tpu.memory_space<vmem>>, vector<8x128xf32>
    %23 = arith.mulf %0, %22 : vector<8x128xf32>
    %c0_20 = arith.constant 0 : index
    %c640 = arith.constant 640 : index
    %24 = vector.load %arg6[%c0_20, %c640] : memref<8x1408xf32, #tpu.memory_space<vmem>>, vector<8x128xf32>
    tpu.vector_store %arg6[%c0_20, %c640], %23 {strides = array<i32>} : memref<8x1408xf32, #tpu.memory_space<vmem>>, vector<8x128xf32>,
    %c0_21 = arith.constant 0 : index
    %c5 = arith.constant 5 : index
    %25 = vector.load %arg5[%c0_21, %c5] : memref<8x136xf32, #tpu.memory_space<vmem>>, vector<8x128xf32>
    %26 = arith.mulf %0, %25 : vector<8x128xf32>
    %c0_22 = arith.constant 0 : index
    %c768 = arith.constant 768 : index
    %27 = vector.load %arg6[%c0_22, %c768] : memref<8x1408xf32, #tpu.memory_space<vmem>>, vector<8x128xf32>
    tpu.vector_store %arg6[%c0_22, %c768], %26 {strides = array<i32>} : memref<8x1408xf32, #tpu.memory_space<vmem>>, vector<8x128xf32>,
    %c0_23 = arith.constant 0 : index
    %c6 = arith.constant 6 : index
    %28 = vector.load %arg5[%c0_23, %c6] : memref<8x136xf32, #tpu.memory_space<vmem>>, vector<8x128xf32>
    %29 = arith.mulf %0, %28 : vector<8x128xf32>
    %c0_24 = arith.constant 0 : index
    %c896 = arith.constant 896 : index
    %30 = vector.load %arg6[%c0_24, %c896] : memref<8x1408xf32, #tpu.memory_space<vmem>>, vector<8x128xf32>
    tpu.vector_store %arg6[%c0_24, %c896], %29 {strides = array<i32>} : memref<8x1408xf32, #tpu.memory_space<vmem>>, vector<8x128xf32>,
    %c0_25 = arith.constant 0 : index
    %c7 = arith.constant 7 : index
    %31 = vector.load %arg5[%c0_25, %c7] : memref<8x136xf32, #tpu.memory_space<vmem>>, vector<8x128xf32>
    %32 = arith.mulf %0, %31 : vector<8x128xf32>
    %c0_26 = arith.constant 0 : index
    %c1024 = arith.constant 1024 : index
    %33 = vector.load %arg6[%c0_26, %c1024] : memref<8x1408xf32, #tpu.memory_space<vmem>>, vector<8x128xf32>
    tpu.vector_store %arg6[%c0_26, %c1024], %32 {strides = array<i32>} : memref<8x1408xf32, #tpu.memory_space<vmem>>, vector<8x128xf32>,
    %c0_27 = arith.constant 0 : index
    %c8 = arith.constant 8 : index
    %34 = vector.load %arg5[%c0_27, %c8] : memref<8x136xf32, #tpu.memory_space<vmem>>, vector<8x128xf32>
    %35 = arith.mulf %0, %34 : vector<8x128xf32>
    %c0_28 = arith.constant 0 : index
    %c1152 = arith.constant 1152 : index
    %36 = vector.load %arg6[%c0_28, %c1152] : memref<8x1408xf32, #tpu.memory_space<vmem>>, vector<8x128xf32>
    tpu.vector_store %arg6[%c0_28, %c1152], %35 {strides = array<i32>} : memref<8x1408xf32, #tpu.memory_space<vmem>>, vector<8x128xf32>,
    %cst_29 = arith.constant 0.000000e+00 : f32
    %37 = vector.broadcast %cst_29 : f32 to vector<8x128xf32>
    %c0_30 = arith.constant 0 : index
    %c1280 = arith.constant 1280 : index
    %38 = vector.load %arg6[%c0_30, %c1280] : memref<8x1408xf32, #tpu.memory_space<vmem>>, vector<8x128xf32>
    tpu.vector_store %arg6[%c0_30, %c1280], %37 {strides = array<i32>} : memref<8x1408xf32, #tpu.memory_space<vmem>>, vector<8x128xf32>,
    %39 = vector.extract_strided_slice %6 {offsets = [0, 0], sizes = [8, 4], strides = [1, 1]} : vector<8x128xf32> to vector<8x4xf32>
    %c0_31 = arith.constant 0 : index
    %c1280_32 = arith.constant 1280 : index
    %40 = vector.load %arg6[%c0_31, %c1280_32] : memref<8x1408xf32, #tpu.memory_space<vmem>>, vector<8x4xf32>
    tpu.vector_store %arg6[%c0_31, %c1280_32], %39 {strides = array<i32>} : memref<8x1408xf32, #tpu.memory_space<vmem>>, vector<8x4xf32>,
    %41 = vector.extract_strided_slice %6 {offsets = [0, 124], sizes = [8, 4], strides = [1, 1]} : vector<8x128xf32> to vector<8x4xf32>
    %c0_33 = arith.constant 0 : index
    %c1284 = arith.constant 1284 : index
    %42 = vector.load %arg6[%c0_33, %c1284] : memref<8x1408xf32, #tpu.memory_space<vmem>>, vector<8x4xf32>
    tpu.vector_store %arg6[%c0_33, %c1284], %41 {strides = array<i32>} : memref<8x1408xf32, #tpu.memory_space<vmem>>, vector<8x4xf32>,
    %c0_34 = arith.constant 0 : index
    %c0_35 = arith.constant 0 : index
    %43 = vector.load %arg6[%c0_34, %c0_35] : memref<8x1408xf32, #tpu.memory_space<vmem>>, vector<8x1408xf32>
    %c0_36 = arith.constant 0 : index
    %c0_37 = arith.constant 0 : index
    %44 = vector.load %arg3[%c0_36, %c0_37] : memref<1408x9xf32, #tpu.memory_space<vmem>>, vector<1408x9xf32>
    %cst_38 = arith.constant dense<0.000000e+00> : vector<8x9xf32>
    %45 = tpu.matmul %43, %44, %cst_38 {dimension_numbers = #tpu.dot_dimension_numbers<[1], [0], [0], [1], [0, 0, 1, 1], [], []>} : vector<8x1408xf32>, vector<1408x9xf32>, vector<8x9xf32> -> vector<8x9xf32>
    %cst_39 = arith.constant 7.812500e-03 : f32
    %46 = vector.broadcast %cst_39 : f32 to vector<8x9xf32>
    %47 = arith.mulf %45, %46 : vector<8x9xf32>
    %c0_40 = arith.constant 0 : index
    %c0_41 = arith.constant 0 : index
    %48 = vector.load %arg4[%c0_40, %c0_41] : memref<8x9xf32, #tpu.memory_space<vmem>>, vector<8x9xf32>
    tpu.vector_store %arg4[%c0_40, %c0_41], %47 {strides = array<i32>} : memref<8x9xf32, #tpu.memory_space<vmem>>, vector<8x9xf32>,
    return
  }
  func.func @transform_0(%arg0: i32) -> (i32, i32) {
    %c0_i32 = arith.constant 0 : i32
    %c0_i32_0 = arith.constant 0 : i32
    return %arg0, %c0_i32 : i32, i32
  }
  func.func @transform_1(%arg0: i32) -> (i32, i32) {
    %c0_i32 = arith.constant 0 : i32
    %c0_i32_0 = arith.constant 0 : i32
    return %arg0, %c0_i32 : i32, i32
  }
  func.func @transform_2(%arg0: i32) -> (i32, i32) {
    %c0_i32 = arith.constant 0 : i32
    %c0_i32_0 = arith.constant 0 : i32
    %c0_i32_1 = arith.constant 0 : i32
    return %c0_i32, %c0_i32_0 : i32, i32
  }
  func.func @transform_3(%arg0: i32) -> (i32, i32) {
    %c0_i32 = arith.constant 0 : i32
    %c0_i32_0 = arith.constant 0 : i32
    return %arg0, %c0_i32 : i32, i32
  }
}

</mosaic_0001>

<bundles_post_ra>
// kernel: tpu_custom_call.1
= control target key start
LH: loop header
LB: loop body
LE: loop exit
PB: predicated region body
PF: predicated region fallthrough
CT: control target
= control target key end

     0   :  { %8 = vsyncpa [#allocation5], 0  ;;  %s1606_s0 = inlined_call_operand.vmem [shape: f32[16,128], index: 0, kind: input, shape index: {}]   ;;  %s1607_s1 = inlined_call_operand.vmem [shape: f32[16,128], index: 1, kind: input, shape index: {}]   ;;  %s1608_s2 = inlined_call_operand.vmem [shape: f32[1408,9], index: 2, kind: input, shape index: {}]   ;;  %s1609_s3 = inlined_call_operand.hbm [shape: f32[16,9], index: 3, kind: output, shape index: {}]  }
   0x1   :  { %10 = vsyncpa [#allocation5 + $0x1], 0  ;;  %s967_s12 = smov 0   ;;  %s969_s13 = smov 0  }
   0x2   :  { %s971_s14 = smov 0   ;;  %s973_s15 = smov 0  }
   0x3 LB: > { %s988_s16 = sadd.s32 4294967295, %s934_s15   ;;  %s811_s17 = sadd.s32 4294967294, %s934_s15   ;;  %s934_s15 = sphi %s973_s15, %s1615_s15   ;;  %s930_s14 = sphi %s971_s14, %s1614_s14   ;;  %s926_s13 = sphi %s969_s13, %s1613_s13   ;;  %s922_s12 = sphi %s967_s12, %s1612_s12  }
   0x4   : > { %s992_s18 = sadd.s32 1, %s934_s15   ;;  %s96_s19 = sadd.s32 1, %s930_s14 }
   0x5   : > { %s93_s20 = ssub.s32 %s934_s15, %s992_s18  ;;  %p106_p0 = scmp.ne.s32.totalorder %s930_s14, %s926_s13 }
   0x6   : > { %p94_p1 = scmp.eq.s32.totalorder %s93_s20, 0  ;;  %p107_p2 = scmp.eq.s32.totalorder %s988_s16, 1 }
   0x7   : > { %p112_p3 = scmp.ne.s32.totalorder %s926_s13, %s922_s12  ;;  %p113_p4 = scmp.eq.s32.totalorder %s811_s17, 1 }
   0x8   : > { %s1003_s21 = scalar_select %p94_p1, %s930_s14, %s96_s19  }
   0x9   : > { %p1005_p5 = por %p107_p2, %p106_p0  ;;  %p1009_p6 = por %p113_p4, %p112_p3 }
   0xa   : > { %p814_p7 = scmp.ge.s32.totalorder %s934_s15, 1  ;;  %p148_p8 = scmp.lt.s32.totalorder %s934_s15, 3 }
   0xc   : > { %p149_p9 = pnand %p814_p7, %p148_p8 }
   0xd   : > { %p175_p10 = scmp.lt.s32.totalorder (!%p149_p9), %s988_s16, 1  ;;  %s938_s25 = smov (!%p149_p9), 127  }
   0xe   : > { %152 = sbr.rel (%p149_p9) target bundleno = 441 (0x1b9), region = 32  ;;  %s939_s26 = smov (!%p149_p9), 126  }
   0xf   : > { %s943_s7 = smov (!%p149_p9), 124   ;;  %s944_s17 = smov (!%p149_p9), 8  }
  0x10   : > { %s945_s19 = smov (!%p149_p9), 121   ;;  %s946_s20 = smov (!%p149_p9), 120  }
  0x11   : > { %s819_s9 = sshll.u32 (!%p149_p9), %s988_s16, 3  ;;  %s892_s29 = scalar_lea.hbm (!%p149_p9), %s1609_s3, 16 }
  0x13   : > { %v340_v0 = vld [vmem:[%s1608_s2 + $0x78] sm:$0xff]  ;;  %v339_v2 = vld [vmem:[%s1608_s2 + $0x70] sm:$0xff]  ;;  %vm185_vm0 = vcmask 31744   ;;  %vm187_vm1 = vcmask 64544   ;;  %s176_s5 = scalar_select %p175_p10, %s988_s16, 1  ;;  %v338_v4 = vld [vmem:[%s1608_s2 + $0x68] sm:$0xff] }
  0x14   : > { %v356_v1 = vld [vmem:[%s1608_s2 + $0xf8] sm:$0xff]  ;;  %501 = vmatpush.msra.mxu0 %v340_v0  ;;  %v355_v3 = vld [vmem:[%s1608_s2 + $0xf0] sm:$0xff]  ;;  %v354_v5 = vld [vmem:[%s1608_s2 + $0xe8] sm:$0xff]  ;;  %v936_v6 = vmov 0.0   ;;  %vm193_vm2 = vcmask 1047584   ;;  %vm211_vm3 = vcmask 1039360  }
  0x15   : > { %521 = vmatpush.msra.mxu1 %v356_v1  ;;  %186 = vst.msk [vmem:[#allocation2] sm:$0xff] %vm185_vm0, %v936_v6  ;;  %s816_s10 = sshll.u32 %s176_s5, 3  ;;  %v337_v7 = vld [vmem:[%s1608_s2 + $0x60] sm:$0xff]  ;;  %v336_v11 = vld [vmem:[%s1608_s2 + $0x58] sm:$0xff]  ;;  %s937_s5 = smov 4   ;;  %v335_v15 = vld [vmem:[%s1608_s2 + $0x50] sm:$0xff] }
  0x16   : > { %502 = vmatpush.msra.mxu0 %v339_v2  ;;  %188 = vst.msk [vmem:[#allocation2 + $0x8] sm:$0xff] %vm187_vm1, %v936_v6  ;;  %s182_s24 = scalar_lea.vmem %s1607_s1, %s816_s10  ;;  %s178_s27 = scalar_lea.vmem %s1606_s0, %s816_s10  ;;  %v353_v8 = vld [vmem:[%s1608_s2 + $0xe0] sm:$0xff]  ;;  %v352_v14 = vld [vmem:[%s1608_s2 + $0xd8] sm:$0xff]  ;;  %v351_v17 = vld [vmem:[%s1608_s2 + $0xd0] sm:$0xff]  ;;  %vm263_vm4 = vcmask 1006592   ;;  %vm224_vm5 = vcmask 1031168  }
  0x17   : > { %522 = vmatpush.msra.mxu1 %v355_v3  ;;  %307 = vst [vmem:[#allocation3 + $0x50] sm:$0xff] %v936_v6  ;;  %v184_v9 = vld [vmem:[%s182_s24] sm:$0xff]  ;;  %v334_v18 = vld [vmem:[%s1608_s2 + $0x48] sm:$0xff]  ;;  %v332_v22 = vld [vmem:[%s1608_s2 + $0x38] sm:$0xff]  ;;  %s941_s24 = smov 122   ;;  %vm237_vm6 = vcmask 1022976  }
  0x18   : > { %503 = vmatpush.msra.mxu0 %v338_v4  ;;  %v1049_v10 = vld [vmem:[%s178_s27] sm:$0xff]  ;;  %190 = vrot.lane.b32.xlu0 %v184_v9, %s937_s5  ;;  %v1054_v12 = vmul.f32 %v184_v9, %v184_v9  ;;  %v350_v19 = vld [vmem:[%s1608_s2 + $0xc8] sm:$0xff]  ;;  %v348_v23 = vld [vmem:[%s1608_s2 + $0xb8] sm:$0xff]  ;;  %s940_s27 = smov 123   ;;  %vm250_vm7 = vcmask 1014784   ;;  %vm276_vm8 = vcmask 998400  }
  0x19   : > { %523 = vmatpush.msra.mxu1 %v354_v5  ;;  %v197_v13 = vmul.f32 %v1049_v10, %v1049_v10  ;;  %v333_v20 = vld [vmem:[%s1608_s2 + $0x40] sm:$0xff]  ;;  %v331_v24 = vld [vmem:[%s1608_s2 + $0x30] sm:$0xff]  ;;  %v330_v26 = vld [vmem:[%s1608_s2 + $0x28] sm:$0xff]  ;;  %vm289_vm9 = vcmask 990208   ;;  %vm302_vm10 = vcmask 982016   ;;  %vm722_vm11 = vcmask 72704  }
  0x1a   : > { %504 = vmatpush.msra.mxu0 %v337_v7  ;;  %308 = vst.msk [vmem:[#allocation3 + $0x50] sm:$0xff] %vm185_vm0, %v1054_v12  ;;  %v349_v21 = vld [vmem:[%s1608_s2 + $0xc0] sm:$0xff]  ;;  %v347_v25 = vld [vmem:[%s1608_s2 + $0xb0] sm:$0xff]  ;;  %v346_v27 = vld [vmem:[%s1608_s2 + $0xa8] sm:$0xff] }
  0x1b   : > { %524 = vmatpush.msra.mxu1 %v353_v8  ;;  %v198_v16 = vadd.f32 %v197_v13, %v1054_v12  ;;  %v329_v28 = vld [vmem:[%s1608_s2 + $0x20] sm:$0xff]  ;;  %v328_v30 = vld [vmem:[%s1608_s2 + $0x18] sm:$0xff]  ;;  %v327_v32 = vld [vmem:[%s1608_s2 + $0x10] sm:$0xff] }
  0x1c   : > { %505 = vmatpush.msra.mxu0 %v336_v11  ;;  %v345_v29 = vld [vmem:[%s1608_s2 + $0xa0] sm:$0xff]  ;;  %v344_v31 = vld [vmem:[%s1608_s2 + $0x98] sm:$0xff]  ;;  %v343_v33 = vld [vmem:[%s1608_s2 + $0x90] sm:$0xff] }
  0x1d   : > { %525 = vmatpush.msra.mxu1 %v352_v14  ;;  %v326_v34 = vld [vmem:[%s1608_s2 + $0x8] sm:$0xff]  ;;  %v325_v36 = vld [vmem:[%s1608_s2] sm:$0xff]  ;;  %v372_v42 = vld [vmem:[%s1608_s2 + $0x178] sm:$0xff] }
  0x1e   : > { %506 = vmatpush.msra.mxu0 %v335_v15  ;;  %v342_v35 = vld [vmem:[%s1608_s2 + $0x88] sm:$0xff]  ;;  %v341_v37 = vld [vmem:[%s1608_s2 + $0x80] sm:$0xff]  ;;  %v371_v43 = vld [vmem:[%s1608_s2 + $0x170] sm:$0xff]  ;;  %541 = vmatpush.msra.mxu2 %v372_v42 }
  0x1f   : > { %526 = vmatpush.msra.mxu1 %v351_v17  ;;  %v370_v44 = vld [vmem:[%s1608_s2 + $0x168] sm:$0xff]  ;;  %v388_v45 = vld [vmem:[%s1608_s2 + $0x1f8] sm:$0xff]  ;;  %v369_v46 = vld [vmem:[%s1608_s2 + $0x160] sm:$0xff] }
  0x20   : > { %507 = vmatpush.msra.mxu0 %v334_v18  ;;  %542 = vmatpush.msra.mxu2 %v371_v43  ;;  %v387_v47 = vld [vmem:[%s1608_s2 + $0x1f0] sm:$0xff]  ;;  %v368_v48 = vld [vmem:[%s1608_s2 + $0x158] sm:$0xff]  ;;  %v366_v50 = vld [vmem:[%s1608_s2 + $0x148] sm:$0xff] }
  0x21   : > { %527 = vmatpush.msra.mxu1 %v350_v19  ;;  %561 = vmatpush.msra.mxu3 %v388_v45  ;;  %v367_v49 = vld [vmem:[%s1608_s2 + $0x150] sm:$0xff]  ;;  %v365_v51 = vld [vmem:[%s1608_s2 + $0x140] sm:$0xff]  ;;  %v364_v52 = vld [vmem:[%s1608_s2 + $0x138] sm:$0xff] }
  0x22   : > { %508 = vmatpush.msra.mxu0 %v333_v20  ;;  %543 = vmatpush.msra.mxu2 %v370_v44  ;;  %v363_v53 = vld [vmem:[%s1608_s2 + $0x130] sm:$0xff]  ;;  %v362_v54 = vld [vmem:[%s1608_s2 + $0x128] sm:$0xff]  ;;  %v361_v55 = vld [vmem:[%s1608_s2 + $0x120] sm:$0xff] }
  0x23   : > { %528 = vmatpush.msra.mxu1 %v349_v21  ;;  %562 = vmatpush.msra.mxu3 %v387_v47  ;;  %v386_v56 = vld [vmem:[%s1608_s2 + $0x1e8] sm:$0xff]  ;;  %v360_v57 = vld [vmem:[%s1608_s2 + $0x118] sm:$0xff]  ;;  %v385_v58 = vld [vmem:[%s1608_s2 + $0x1e0] sm:$0xff] }
  0x24   : > { %509 = vmatpush.msra.mxu0 %v332_v22  ;;  %544 = vmatpush.msra.mxu2 %v369_v46  ;;  %v359_v59 = vld [vmem:[%s1608_s2 + $0x110] sm:$0xff]  ;;  %v384_v60 = vld [vmem:[%s1608_s2 + $0x1d8] sm:$0xff]  ;;  %v358_v62 = vld [vmem:[%s1608_s2 + $0x108] sm:$0xff] }
  0x25   : > { %529 = vmatpush.msra.mxu1 %v348_v23  ;;  %563 = vmatpush.msra.mxu3 %v386_v56  ;;  %v404_v61 = vld [vmem:[%s1608_s2 + $0x278] sm:$0xff]  ;;  %v383_v63 = vld [vmem:[%s1608_s2 + $0x1d0] sm:$0xff]  ;;  %v357_v1 = vld [vmem:[%s1608_s2 + $0x100] sm:$0xff] }
  0x26   : > { %510 = vmatpush.msra.mxu0 %v331_v24  ;;  %545 = vmatpush.msra.mxu2 %v368_v48  ;;  %v403_v0 = vld [vmem:[%s1608_s2 + $0x270] sm:$0xff]  ;;  %v382_v2 = vld [vmem:[%s1608_s2 + $0x1c8] sm:$0xff]  ;;  %v436_v4 = vld [vmem:[%s1608_s2 + $0x378] sm:$0xff] }
  0x27   : > { %530 = vmatpush.msra.mxu1 %v347_v25  ;;  %564 = vmatpush.msra.mxu3 %v385_v58  ;;  %v402_v3 = vld [vmem:[%s1608_s2 + $0x268] sm:$0xff]  ;;  %v381_v5 = vld [vmem:[%s1608_s2 + $0x1c0] sm:$0xff]  ;;  %v435_v7 = vld [vmem:[%s1608_s2 + $0x370] sm:$0xff] }
  0x28   : > { %511 = vmatpush.msra.mxu0 %v330_v26  ;;  %546 = vmatpush.msra.mxu2 %v367_v49  ;;  %v401_v6 = vld [vmem:[%s1608_s2 + $0x260] sm:$0xff]  ;;  %v380_v8 = vld [vmem:[%s1608_s2 + $0x1b8] sm:$0xff]  ;;  %v379_v13 = vld [vmem:[%s1608_s2 + $0x1b0] sm:$0xff] }
  0x29   : > { %531 = vmatpush.msra.mxu1 %v346_v27  ;;  %565 = vmatpush.msra.mxu3 %v384_v60  ;;  %v400_v9 = vld [vmem:[%s1608_s2 + $0x258] sm:$0xff]  ;;  %v399_v14 = vld [vmem:[%s1608_s2 + $0x250] sm:$0xff]  ;;  %v378_v17 = vld [vmem:[%s1608_s2 + $0x1a8] sm:$0xff] }
  0x2a   : > { %512 = vmatpush.msra.mxu0 %v329_v28  ;;  %547 = vmatpush.msra.mxu2 %v366_v50  ;;  %v420_v11 = vld [vmem:[%s1608_s2 + $0x2f8] sm:$0xff]  ;;  %v419_v15 = vld [vmem:[%s1608_s2 + $0x2f0] sm:$0xff]  ;;  %v398_v18 = vld [vmem:[%s1608_s2 + $0x248] sm:$0xff] }
  0x2b   : > { %532 = vmatpush.msra.mxu1 %v345_v29  ;;  %566 = vmatpush.msra.mxu3 %v383_v63  ;;  %v418_v19 = vld [vmem:[%s1608_s2 + $0x2e8] sm:$0xff]  ;;  %v432_v20 = vld [vmem:[%s1608_s2 + $0x358] sm:$0xff]  ;;  %v377_v21 = vld [vmem:[%s1608_s2 + $0x1a0] sm:$0xff] }
  0x2c   : > { %513 = vmatpush.msra.mxu0 %v328_v30  ;;  %548 = vmatpush.msra.mxu2 %v365_v51  ;;  %v397_v22 = vld [vmem:[%s1608_s2 + $0x240] sm:$0xff]  ;;  %v431_v24 = vld [vmem:[%s1608_s2 + $0x350] sm:$0xff]  ;;  %v376_v25 = vld [vmem:[%s1608_s2 + $0x198] sm:$0xff] }
  0x2d   : > { %533 = vmatpush.msra.mxu1 %v344_v31  ;;  %567 = vmatpush.msra.mxu3 %v382_v2  ;;  %v417_v23 = vld [vmem:[%s1608_s2 + $0x2e0] sm:$0xff]  ;;  %v396_v26 = vld [vmem:[%s1608_s2 + $0x238] sm:$0xff]  ;;  %v430_v28 = vld [vmem:[%s1608_s2 + $0x348] sm:$0xff] }
  0x2e   : > { %514 = vmatpush.msra.mxu0 %v327_v32  ;;  %549 = vmatpush.msra.mxu2 %v364_v52  ;;  %v416_v27 = vld [vmem:[%s1608_s2 + $0x2d8] sm:$0xff]  ;;  %v375_v29 = vld [vmem:[%s1608_s2 + $0x190] sm:$0xff]  ;;  %v429_v32 = vld [vmem:[%s1608_s2 + $0x340] sm:$0xff] }
  0x2f   : > { %534 = vmatpush.msra.mxu1 %v343_v33  ;;  %568 = vmatpush.msra.mxu3 %v381_v5  ;;  %v395_v30 = vld [vmem:[%s1608_s2 + $0x230] sm:$0xff]  ;;  %v374_v33 = vld [vmem:[%s1608_s2 + $0x188] sm:$0xff]  ;;  %v392_v42 = vld [vmem:[%s1608_s2 + $0x218] sm:$0xff] }
  0x30   : > { %515 = vmatpush.msra.mxu0 %v326_v34  ;;  %550 = vmatpush.msra.mxu2 %v363_v53  ;;  %v415_v31 = vld [vmem:[%s1608_s2 + $0x2d0] sm:$0xff]  ;;  %v394_v34 = vld [vmem:[%s1608_s2 + $0x228] sm:$0xff]  ;;  %v412_v43 = vld [vmem:[%s1608_s2 + $0x2b8] sm:$0xff] }
  0x31   : > { %535 = vmatpush.msra.mxu1 %v342_v35  ;;  %569 = vmatpush.msra.mxu3 %v380_v8  ;;  %v414_v35 = vld [vmem:[%s1608_s2 + $0x2c8] sm:$0xff]  ;;  %v451_v45 = vld [vmem:[%s1608_s2 + $0x3f0] sm:$0xff]  ;;  %v425_v48 = vld [vmem:[%s1608_s2 + $0x320] sm:$0xff] }
  0x32   : > { %516 = vmatpush.msra.mxu0 %v325_v36  ;;  %551 = vmatpush.msra.mxu2 %v362_v54  ;;  %v428_v36 = vld [vmem:[%s1608_s2 + $0x338] sm:$0xff]  ;;  %v426_v44 = vld [vmem:[%s1608_s2 + $0x328] sm:$0xff]  ;;  %v391_v46 = vld [vmem:[%s1608_s2 + $0x210] sm:$0xff] }
  0x33   : > { %536 = vmatpush.msra.mxu1 %v341_v37  ;;  %517 = vmatmul.f32.vlgmr.msra.gmra.mxu0 %v198_v16  ;;  %v433_v16 = vld [vmem:[%s1608_s2 + $0x360] sm:$0xff]  ;;  %v411_v47 = vld [vmem:[%s1608_s2 + $0x2b0] sm:$0xff]  ;;  %v450_v49 = vld [vmem:[%s1608_s2 + $0x3e8] sm:$0xff] }
  0x34   : > { %552 = vmatpush.msra.mxu2 %v361_v55  ;;  %581 = vmatpush.msrb.mxu0 %v404_v61  ;;  %v373_v37 = vld [vmem:[%s1608_s2 + $0x180] sm:$0xff]  ;;  %v390_v50 = vld [vmem:[%s1608_s2 + $0x208] sm:$0xff]  ;;  %v424_v52 = vld [vmem:[%s1608_s2 + $0x318] sm:$0xff] }
  0x35   : > { %601 = vmatpush.msrb.mxu1 %v420_v11  ;;  %570 = vmatpush.msra.mxu3 %v379_v13  ;;  %v410_v51 = vld [vmem:[%s1608_s2 + $0x2a8] sm:$0xff]  ;;  %v449_v53 = vld [vmem:[%s1608_s2 + $0x3e0] sm:$0xff]  ;;  %v423_v56 = vld [vmem:[%s1608_s2 + $0x310] sm:$0xff] }
  0x36   : > { %553 = vmatpush.msra.mxu2 %v360_v57  ;;  %582 = vmatpush.msrb.mxu0 %v403_v0  ;;  %v389_v54 = vld [vmem:[%s1608_s2 + $0x200] sm:$0xff]  ;;  %v448_v57 = vld [vmem:[%s1608_s2 + $0x3d8] sm:$0xff]  ;;  %v422_v60 = vld [vmem:[%s1608_s2 + $0x308] sm:$0xff] }
  0x37   : > { %602 = vmatpush.msrb.mxu1 %v419_v15  ;;  %571 = vmatpush.msra.mxu3 %v378_v17  ;;  %v409_v55 = vld [vmem:[%s1608_s2 + $0x2a0] sm:$0xff]  ;;  %v468_v58 = vld [vmem:[%s1608_s2 + $0x478] sm:$0xff]  ;;  %v447_v61 = vld [vmem:[%s1608_s2 + $0x3d0] sm:$0xff] }
  0x38   : > { %554 = vmatpush.msra.mxu2 %v359_v59  ;;  %583 = vmatpush.msrb.mxu0 %v402_v3  ;;  %v408_v59 = vld [vmem:[%s1608_s2 + $0x298] sm:$0xff]  ;;  %v407_v63 = vld [vmem:[%s1608_s2 + $0x290] sm:$0xff]  ;;  %v421_v0 = vld [vmem:[%s1608_s2 + $0x300] sm:$0xff] }
  0x39   : > { %603 = vmatpush.msrb.mxu1 %v418_v19  ;;  %572 = vmatpush.msra.mxu3 %v377_v21  ;;  %v466_v2 = vld [vmem:[%s1608_s2 + $0x468] sm:$0xff]  ;;  %v465_v5 = vld [vmem:[%s1608_s2 + $0x460] sm:$0xff]  ;;  %v464_v8 = vld [vmem:[%s1608_s2 + $0x458] sm:$0xff] }
  0x3a   : > { %555 = vmatpush.msra.mxu2 %v358_v62  ;;  %584 = vmatpush.msrb.mxu0 %v401_v6  ;;  %v467_v62 = vld [vmem:[%s1608_s2 + $0x470] sm:$0xff]  ;;  %v406_v3 = vld [vmem:[%s1608_s2 + $0x288] sm:$0xff]  ;;  %v405_v6 = vld [vmem:[%s1608_s2 + $0x280] sm:$0xff] }
  0x3b   : > { %604 = vmatpush.msrb.mxu1 %v417_v23  ;;  %573 = vmatpush.msra.mxu3 %v376_v25  ;;  %v443_v11 = vld [vmem:[%s1608_s2 + $0x3b0] sm:$0xff]  ;;  %v462_v15 = vld [vmem:[%s1608_s2 + $0x448] sm:$0xff]  ;;  %v441_v17 = vld [vmem:[%s1608_s2 + $0x3a0] sm:$0xff] }
  0x3c   : > { %556 = vmatpush.msra.mxu2 %v357_v1  ;;  %585 = vmatpush.msrb.mxu0 %v400_v9  ;;  %v446_v1 = vld [vmem:[%s1608_s2 + $0x3c8] sm:$0xff]  ;;  %v484_v9 = vld [vmem:[%s1608_s2 + $0x4f8] sm:$0xff]  ;;  %v483_v13 = vld [vmem:[%s1608_s2 + $0x4f0] sm:$0xff] }
  0x3d   : > { %605 = vmatpush.msrb.mxu1 %v416_v27  ;;  %574 = vmatpush.msra.mxu3 %v375_v29  ;;  %v481_v19 = vld [vmem:[%s1608_s2 + $0x4e0] sm:$0xff]  ;;  %v460_v21 = vld [vmem:[%s1608_s2 + $0x438] sm:$0xff]  ;;  %v459_v25 = vld [vmem:[%s1608_s2 + $0x430] sm:$0xff] }
  0x3e   : > { %621 = vmatpush.msrb.mxu2 %v436_v4  ;;  %586 = vmatpush.msrb.mxu0 %v399_v14  ;;  %v445_v4 = vld [vmem:[%s1608_s2 + $0x3c0] sm:$0xff]  ;;  %v442_v14 = vld [vmem:[%s1608_s2 + $0x3a8] sm:$0xff] }
  0x3f   : > { %606 = vmatpush.msrb.mxu1 %v415_v31  ;;  %575 = vmatpush.msra.mxu3 %v374_v33  ;;  %v438_v27 = vld [vmem:[%s1608_s2 + $0x388] sm:$0xff]  ;;  %v457_v31 = vld [vmem:[%s1608_s2 + $0x420] sm:$0xff]  ;;  %v456_v33 = vld [vmem:[%s1608_s2 + $0x418] sm:$0xff] }
  0x40   : > { %622 = vmatpush.msrb.mxu2 %v435_v7  ;;  %587 = vmatpush.msrb.mxu0 %v398_v18  ;;  %v444_v7 = vld [vmem:[%s1608_s2 + $0x3b8] sm:$0xff]  ;;  %v461_v18 = vld [vmem:[%s1608_s2 + $0x440] sm:$0xff]  ;;  %v478_v29 = vld [vmem:[%s1608_s2 + $0x4c8] sm:$0xff] }
  0x41   : > { %607 = vmatpush.msrb.mxu1 %v414_v35  ;;  %576 = vmatpush.msra.mxu3 %v373_v37  ;;  %v455_v35 = vld [vmem:[%s1608_s2 + $0x410] sm:$0xff] }
  0x42   : > { %588 = vmatpush.msrb.mxu0 %v397_v22  ;;  %v480_v22 = vld [vmem:[%s1608_s2 + $0x4d8] sm:$0xff] }
  0x44   : > { %589 = vmatpush.msrb.mxu0 %v396_v26  ;;  %v479_v26 = vld [vmem:[%s1608_s2 + $0x4d0] sm:$0xff] }
  0x46   : > { %590 = vmatpush.msrb.mxu0 %v395_v30  ;;  %v437_v30 = vld [vmem:[%s1608_s2 + $0x380] sm:$0xff] }
  0x48   : > { %591 = vmatpush.msrb.mxu0 %v394_v34  ;;  %v476_v34 = vld [vmem:[%s1608_s2 + $0x4b8] sm:$0xff] }
  0x8a   : > { %v191_v38 = vpop.permute.xlu0 %190 }
  0x8b   : > { %194 = vst.msk [vmem:[#allocation2] sm:$0xff] %vm193_vm2, %v191_v38 }
  0x8c   : > { %195 = vst.msk [vmem:[#allocation2 + $0x8] sm:$0xff] %vm185_vm0, %v191_v38  ;;  %v393_v38 = vld [vmem:[%s1608_s2 + $0x220] sm:$0xff] }
  0x8d   : > { %592 = vmatpush.msrb.mxu0 %v393_v38 }
  0x8f   : > { %593 = vmatpush.msrb.mxu0 %v392_v42 }
  0x91   : > { %594 = vmatpush.msrb.mxu0 %v391_v46  ;;  %v473_v46 = vld [vmem:[%s1608_s2 + $0x4a0] sm:$0xff] }
  0x92   : > { %v200_v39 = vld [vmem:[#allocation2] sm:$0xff] }
  0x93   : > { %v217_v40 = vld [vmem:[#allocation2 + $0x8] sm:$0xff]  ;;  %207 = vrot.lane.b32.xlu0 %v200_v39, %s938_s25  ;;  %v201_v41 = vmul.f32 %v200_v39, %v1049_v10  ;;  %595 = vmatpush.msrb.mxu0 %v390_v50  ;;  %v471_v50 = vld [vmem:[%s1608_s2 + $0x490] sm:$0xff] }
  0x94   : > { %222 = vrot.lane.b32.xlu2 %v217_v40, %s939_s26  ;;  %209 = vrot.lane.b32.xlu1 %v217_v40, %s938_s25  ;;  %s942_s25 = smov 125  }
  0x95   : > { %537 = vmatmul.f32.vlgmr.msra.gmra.mxu1 %v201_v41  ;;  %v452_v41 = vld [vmem:[%s1608_s2 + $0x3f8] sm:$0xff]  ;;  %596 = vmatpush.msrb.mxu0 %v389_v54  ;;  %v497_v54 = vld [vmem:[%s1608_s2 + $0x560] sm:$0xff] }
  0x96   : > { %641 = vmatpush.msrb.mxu3 %v452_v41  ;;  %v474_v41 = vld [vmem:[%s1608_s2 + $0x4a8] sm:$0xff] }
  0x97   : > { %661 = vmatpush.msra.mxu0 %v468_v58 }
  0x98   : > { %642 = vmatpush.msrb.mxu3 %v451_v45  ;;  %v453_v45 = vld [vmem:[%s1608_s2 + $0x400] sm:$0xff] }
  0x99   : > { %662 = vmatpush.msra.mxu0 %v467_v62  ;;  %v495_v62 = vld [vmem:[%s1608_s2 + $0x550] sm:$0xff] }
  0x9a   : > { %643 = vmatpush.msrb.mxu3 %v450_v49  ;;  %v498_v49 = vld [vmem:[%s1608_s2 + $0x568] sm:$0xff] }
  0x9b   : > { %261 = vrot.lane.b32.xlu0 %v217_v40, %s940_s27  ;;  %663 = vmatpush.msra.mxu0 %v466_v2  ;;  %v493_v2 = vld [vmem:[%s1608_s2 + $0x540] sm:$0xff] }
  0x9c   : > { %259 = vrot.lane.b32.xlu2 %v200_v39, %s940_s27  ;;  %220 = vrot.lane.b32.xlu1 %v200_v39, %s939_s26 }
  0x9d   : > { %644 = vmatpush.msrb.mxu3 %v449_v53  ;;  %664 = vmatpush.msra.mxu0 %v465_v5  ;;  %v492_v5 = vld [vmem:[%s1608_s2 + $0x538] sm:$0xff] }
  0x9f   : > { %645 = vmatpush.msrb.mxu3 %v448_v57  ;;  %665 = vmatpush.msra.mxu0 %v464_v8  ;;  %v490_v8 = vld [vmem:[%s1608_s2 + $0x528] sm:$0xff] }
  0xa1   : > { %646 = vmatpush.msrb.mxu3 %v447_v61  ;;  %v469_v61 = vld [vmem:[%s1608_s2 + $0x480] sm:$0xff] }
  0xa3   : > { %272 = vrot.lane.b32.xlu0 %v200_v39, %s941_s24  ;;  %647 = vmatpush.msrb.mxu3 %v446_v1 }
  0xa4   : > { %235 = vrot.lane.b32.xlu2 %v217_v40, %s942_s25  ;;  %233 = vrot.lane.b32.xlu1 %v200_v39, %s942_s25 }
  0xa5   : > { %648 = vmatpush.msrb.mxu3 %v445_v4 }
  0xa7   : > { %649 = vmatpush.msrb.mxu3 %v444_v7  ;;  %v491_v7 = vld [vmem:[%s1608_s2 + $0x530] sm:$0xff] }
  0xa9   : > { %650 = vmatpush.msrb.mxu3 %v443_v11 }
  0xab   : > { %248 = vrot.lane.b32.xlu0 %v217_v40, %s943_s7  ;;  %651 = vmatpush.msrb.mxu3 %v442_v14 }
  0xac   : > { %246 = vrot.lane.b32.xlu2 %v200_v39, %s943_s7  ;;  %274 = vrot.lane.b32.xlu1 %v217_v40, %s941_s24  ;;  %s172_s7 = sand.u32 1, %s926_s13  }
  0xad   : > { %652 = vmatpush.msrb.mxu3 %v441_v17  ;;  %v488_v17 = vld [vmem:[%s1608_s2 + $0x518] sm:$0xff]  ;;  %s815_s8 = sshll.u32 %s172_s7, 3  ;;  %s725_s25 = scalar_lea.sflag [#allocation5], %s172_s7 }
  0xb3   : > { %310 = vrot.lane.b32.xlu0 %v1054_v12, %s944_s17  ;;  %v434_v12 = vld [vmem:[%s1608_s2 + $0x368] sm:$0xff]  ;;  %s735_s17 = scalar_lea.hbm %s1609_s3, %s819_s9 }
  0xb4   : > { %287 = vrot.lane.b32.xlu2 %v217_v40, %s945_s19  ;;  %285 = vrot.lane.b32.xlu1 %v200_v39, %s945_s19  ;;  %s174_s19 = scalar_lea.vmem [#allocation4], %s815_s8  ;;  %s739_s24 = sshll.u32 %s735_s17, 4  ;;  %s740_s24 = int_to_ptr.hbm [resolvable:$true] %s739_s24 }
  0xb5   : > { %623 = vmatpush.msrb.mxu2 %v434_v12  ;;  %v463_v12 = vld [vmem:[%s1608_s2 + $0x450] sm:$0xff]  ;;  %s886_s16 = sshra.s32 %s740_s24, 4  ;;  %s887_s16 = int_to_ptr.hbm [resolvable:$true] %s886_s16 }
  0xb6   : > { %666 = vmatpush.msra.mxu0 %v463_v12  ;;  %s888_s26 = scalar_lea.hbm %s887_s16, 8  ;;  %p893_p0 = scmp.lt.s32.totalorder %s887_s16, %s1609_s3 }
  0xb7   : > { %624 = vmatpush.msrb.mxu2 %v433_v16  ;;  %v482_v16 = vld [vmem:[%s1608_s2 + $0x4e8] sm:$0xff]  ;;  %p889_p11 = scmp.ne.s32.totalorder %s887_s16, %s888_s26  ;;  %p894_p1 = scmp.lt.s32.totalorder %s892_s29, %s888_s26 }
  0xb8   : > { %667 = vmatpush.msra.mxu0 %v462_v15 }
  0xb9   : > { %625 = vmatpush.msrb.mxu2 %v432_v20  ;;  %v440_v20 = vld [vmem:[%s1608_s2 + $0x398] sm:$0xff]  ;;  %p890_p12 = pnand %p889_p11, %p1005_p5  ;;  %p895_p2 = por %p894_p1, %p893_p0 }
  0xba   : > { %668 = vmatpush.msra.mxu0 %v461_v18  ;;  %653 = vmatpush.msrb.mxu3 %v440_v20  ;;  %v487_v18 = vld [vmem:[%s1608_s2 + $0x510] sm:$0xff]  ;;  %v486_v20 = vld [vmem:[%s1608_s2 + $0x508] sm:$0xff] }
  0xbb   : > { %626 = vmatpush.msrb.mxu2 %v431_v24  ;;  %v439_v24 = vld [vmem:[%s1608_s2 + $0x390] sm:$0xff]  ;;  %p891_p13 = pneg %p890_p12 }
  0xbc   : > { %300 = vrot.lane.b32.xlu2 %v217_v40, %s946_s20  ;;  %298 = vrot.lane.b32.xlu1 %v200_v39, %s946_s20  ;;  %v413_v39 = vld [vmem:[%s1608_s2 + $0x2c0] sm:$0xff]  ;;  %v427_v40 = vld [vmem:[%s1608_s2 + $0x330] sm:$0xff]  ;;  %s737_s20 = sshll.u32 %s174_s19, 4  ;;  %s738_s20 = int_to_ptr.vmem [resolvable:$true] %s737_s20 }
  0xbd   : > { %627 = vmatpush.msrb.mxu2 %v430_v28  ;;  %608 = vmatpush.msrb.mxu1 %v413_v39  ;;  %v458_v28 = vld [vmem:[%s1608_s2 + $0x428] sm:$0xff]  ;;  %p896_p3 = pnand %p895_p2, %p891_p13 }
  0xbe   : > { %669 = vmatpush.msra.mxu0 %v460_v21  ;;  %654 = vmatpush.msrb.mxu3 %v439_v24 }
  0xbf   : > { %628 = vmatpush.msrb.mxu2 %v429_v32  ;;  %609 = vmatpush.msrb.mxu1 %v412_v43  ;;  %v477_v32 = vld [vmem:[%s1608_s2 + $0x4c0] sm:$0xff] }
  0xc0   : > { %670 = vmatpush.msra.mxu0 %v459_v25  ;;  %655 = vmatpush.msrb.mxu3 %v438_v27 }
  0xc1   : > { %629 = vmatpush.msrb.mxu2 %v428_v36  ;;  %610 = vmatpush.msrb.mxu1 %v411_v47  ;;  %v475_v36 = vld [vmem:[%s1608_s2 + $0x4b0] sm:$0xff] }
  0xc2   : > { %671 = vmatpush.msra.mxu0 %v458_v28  ;;  %656 = vmatpush.msrb.mxu3 %v437_v30  ;;  %v499_v47 = vld [vmem:[%s1608_s2 + $0x570] sm:$0xff] }
  0xc3   : > { %630 = vmatpush.msrb.mxu2 %v427_v40  ;;  %611 = vmatpush.msrb.mxu1 %v410_v51  ;;  %v454_v40 = vld [vmem:[%s1608_s2 + $0x408] sm:$0xff] }
  0xc4   : > { %672 = vmatpush.msra.mxu0 %v457_v31  ;;  %v518_v31 = vpop.f32.mrf.mxu0 }
  0xc5   : > { %631 = vmatpush.msrb.mxu2 %v426_v44  ;;  %612 = vmatpush.msrb.mxu1 %v409_v55  ;;  %v500_v44 = vld [vmem:[%s1608_s2 + $0x578] sm:$0xff]  ;;  %v470_v55 = vld [vmem:[%s1608_s2 + $0x488] sm:$0xff] }
  0xc6   : > { %673 = vmatpush.msra.mxu0 %v456_v33 }
  0xc7   : > { %632 = vmatpush.msrb.mxu2 %v425_v48  ;;  %613 = vmatpush.msrb.mxu1 %v408_v59  ;;  %v472_v48 = vld [vmem:[%s1608_s2 + $0x498] sm:$0xff] }
  0xc8   : > { %674 = vmatpush.msra.mxu0 %v455_v35 }
  0xc9   : > { %633 = vmatpush.msrb.mxu2 %v424_v52  ;;  %614 = vmatpush.msrb.mxu1 %v407_v63  ;;  %v494_v63 = vld [vmem:[%s1608_s2 + $0x548] sm:$0xff] }
  0xca   : > { %675 = vmatpush.msra.mxu0 %v454_v40 }
  0xcb   : > { %634 = vmatpush.msrb.mxu2 %v423_v56  ;;  %615 = vmatpush.msrb.mxu1 %v406_v3 }
  0xcc   : > { %676 = vmatpush.msra.mxu0 %v453_v45 }
  0xcd   : > { %635 = vmatpush.msrb.mxu2 %v422_v60  ;;  %616 = vmatpush.msrb.mxu1 %v405_v6  ;;  %v496_v60 = vld [vmem:[%s1608_s2 + $0x558] sm:$0xff] }
  0xcf   : > { %636 = vmatpush.msrb.mxu2 %v421_v0  ;;  %681 = vmatpush.msra.mxu1 %v484_v9 }
  0xd1   : > { %682 = vmatpush.msra.mxu1 %v483_v13  ;;  %v489_v13 = vld [vmem:[%s1608_s2 + $0x520] sm:$0xff] }
  0xd3   : > { %683 = vmatpush.msra.mxu1 %v482_v16 }
  0xd5   : > { %684 = vmatpush.msra.mxu1 %v481_v19 }
  0xd7   : > { %685 = vmatpush.msra.mxu1 %v480_v22 }
  0xd9   : > { %686 = vmatpush.msra.mxu1 %v479_v26 }
  0xdb   : > { %687 = vmatpush.msra.mxu1 %v478_v29 }
  0xdd   : > { %688 = vmatpush.msra.mxu1 %v477_v32 }
  0xdf   : > { %689 = vmatpush.msra.mxu1 %v476_v34 }
  0xe1   : > { %690 = vmatpush.msra.mxu1 %v475_v36 }
  0xe3   : > { %691 = vmatpush.msra.mxu1 %v474_v41 }
  0xe5   : > { %692 = vmatpush.msra.mxu1 %v473_v46 }
  0xe7   : > { %693 = vmatpush.msra.mxu1 %v472_v48 }
  0xe9   : > { %694 = vmatpush.msra.mxu1 %v471_v50 }
  0xeb   : > { %695 = vmatpush.msra.mxu1 %v470_v55 }
  0xed   : > { %696 = vmatpush.msra.mxu1 %v469_v61 }
  0xee   : > { %v223_v23 = vpop.permute.xlu2 %222 }
  0xf6   : > { %v260_v38 = vpop.permute.xlu2 %259 }
  0xfe   : > { %v236_v58 = vpop.permute.xlu2 %235 }
 0x105   : > { %v208_v37 = vpop.permute.xlu0 %207 }
 0x106   : > { %v210_v39 = vpop.permute.xlu1 %209  ;;  %v247_v6 = vpop.permute.xlu2 %246 }
 0x107   : > { %v212_v42 = vsel %vm211_vm3, %v208_v37, %v210_v39 }
 0x108   : > { %v214_v43 = vmul.f32 %v212_v42, %v1049_v10 }
 0x10a   : > { %557 = vmatmul.f32.vlgmr.msra.gmra.mxu2 %v214_v43 }
 0x10b   : > { %701 = vmatpush.msra.mxu2 %v500_v44 }
 0x10d   : > { %v262_v51 = vpop.permute.xlu0 %261  ;;  %702 = vmatpush.msra.mxu2 %v499_v47 }
 0x10e   : > { %v221_v52 = vpop.permute.xlu1 %220  ;;  %v264_v53 = vsel %vm263_vm4, %v260_v38, %v262_v51  ;;  %v288_v19 = vpop.permute.xlu2 %287 }
 0x10f   : > { %v225_v56 = vsel %vm224_vm5, %v221_v52, %v223_v23  ;;  %v266_v57 = vmul.f32 %v264_v53, %v1049_v10  ;;  %703 = vmatpush.msra.mxu2 %v498_v49  ;;  %v485_v23 = vld [vmem:[%s1608_s2 + $0x500] sm:$0xff] }
 0x110   : > { %v227_v59 = vmul.f32 %v225_v56, %v1049_v10 }
 0x111   : > { %704 = vmatpush.msra.mxu2 %v497_v54 }
 0x112   : > { %577 = vmatmul.f32.vlgmr.msra.gmra.mxu3 %v227_v59  ;;  %637 = vmatmul.f32.vlgmr.msrb.gmra.mxu2 %v266_v57  ;;  %v538_v32 = vpop.f32.mrf.mxu1 }
 0x113   : > { %705 = vmatpush.msra.mxu2 %v496_v60  ;;  %v539_v34 = vadd.f32 %v538_v32, %v518_v31 }
 0x115   : > { %v273_v0 = vpop.permute.xlu0 %272  ;;  %706 = vmatpush.msra.mxu2 %v495_v62 }
 0x116   : > { %v234_v1 = vpop.permute.xlu1 %233  ;;  %v301_v27 = vpop.permute.xlu2 %300 }
 0x117   : > { %v238_v3 = vsel %vm237_vm6, %v234_v1, %v236_v58  ;;  %707 = vmatpush.msra.mxu2 %v494_v63 }
 0x118   : > { %v240_v4 = vmul.f32 %v238_v3, %v1049_v10 }
 0x119   : > { %708 = vmatpush.msra.mxu2 %v493_v2 }
 0x11a   : > { %597 = vmatmul.f32.vlgmr.msrb.gmra.mxu0 %v240_v4 }
 0x11b   : > { %709 = vmatpush.msra.mxu2 %v492_v5 }
 0x11d   : > { %v249_v9 = vpop.permute.xlu0 %248  ;;  %710 = vmatpush.msra.mxu2 %v491_v7 }
 0x11e   : > { %v275_v11 = vpop.permute.xlu1 %274  ;;  %v251_v12 = vsel %vm250_vm7, %v247_v6, %v249_v9 }
 0x11f   : > { %v277_v14 = vsel %vm276_vm8, %v273_v0, %v275_v11  ;;  %v253_v15 = vmul.f32 %v251_v12, %v1049_v10  ;;  %711 = vmatpush.msra.mxu2 %v490_v8 }
 0x120   : > { %v279_v16 = vmul.f32 %v277_v14, %v1049_v10 }
 0x121   : > { %617 = vmatmul.f32.vlgmr.msrb.gmra.mxu1 %v253_v15  ;;  %712 = vmatpush.msra.mxu2 %v489_v13 }
 0x122   : > { %657 = vmatmul.f32.vlgmr.msrb.gmra.mxu3 %v279_v16 }
 0x123   : > { %713 = vmatpush.msra.mxu2 %v488_v17 }
 0x125   : > { %v311_v21 = vpop.permute.xlu0 %310  ;;  %714 = vmatpush.msra.mxu2 %v487_v18 }
 0x126   : > { %v286_v22 = vpop.permute.xlu1 %285  ;;  %313 = vst.msk [vmem:[#allocation3 + $0x50] sm:$0xff] %vm187_vm1, %v311_v21 }
 0x127   : > { %v290_v24 = vsel %vm289_vm9, %v286_v22, %v288_v19  ;;  %715 = vmatpush.msra.mxu2 %v486_v20 }
 0x128   : > { %v292_v25 = vmul.f32 %v290_v24, %v1049_v10 }
 0x129   : > { %716 = vmatpush.msra.mxu2 %v485_v23 }
 0x12a   : > { %677 = vmatmul.f32.vlgmr.msra.gmra.mxu0 %v292_v25 }
 0x12d   : > { %v324_v26 = vld [vmem:[#allocation3 + $0x50] sm:$0xff] }
 0x12e   : > { %v299_v28 = vpop.permute.xlu1 %298  ;;  %717 = vmatmul.f32.vlgmr.msra.gmra.mxu2 %v324_v26 }
 0x12f   : > { %v303_v29 = vsel %vm302_vm10, %v299_v28, %v301_v27 }
 0x130   : > { %v305_v30 = vmul.f32 %v303_v29, %v1049_v10 }
 0x132   : > { %697 = vmatmul.f32.vlgmr.msra.gmra.mxu1 %v305_v30 }
 0x18d   : > { %v558_v33 = vpop.f32.mrf.mxu2 }
 0x18e   : > { %v559_v36 = vadd.f32 %v558_v33, %v539_v34 }
 0x195   : > { %v578_v35 = vpop.f32.mrf.mxu3  ;;  %v638_v42 = vpop.f32.mrf.mxu2 }
 0x196   : > { %v579_v37 = vadd.f32 %v578_v35, %v559_v36 }
 0x197   : > { %v598_v38 = vpop.f32.mrf.mxu0 }
 0x198   : > { %v599_v40 = vadd.f32 %v598_v38, %v579_v37 }
 0x19e   : > { %v618_v39 = vpop.f32.mrf.mxu1 }
 0x19f   : > { %v619_v41 = vadd.f32 %v618_v39, %v599_v40 }
 0x1a1   : > { %v639_v44 = vadd.f32 %v638_v42, %v619_v41 }
 0x1a5   : > { %v658_v43 = vpop.f32.mrf.mxu3 }
 0x1a6   : > { %v659_v45 = vadd.f32 %v658_v43, %v639_v44 }
 0x1a7   : > { %v678_v10 = vpop.f32.mrf.mxu0 }
 0x1a8   : > { %v679_v46 = vadd.f32 %v678_v10, %v659_v45 }
 0x1af   : > { %v698_v47 = vpop.f32.mrf.mxu1 }
 0x1b0   : > { %v699_v48 = vadd.f32 %v698_v47, %v679_v46 }
 0x1b1   : > { %v718_v49 = vpop.f32.mrf.mxu2 }
 0x1b2   : > { %v719_v50 = vadd.f32 %v718_v49, %v699_v48 }
 0x1b4   : > { %v721_v51 = vmul.f32 0.0078125, %v719_v50 }
 0x1b6   : > { %723 = vst.msk [vmem:[%s174_s19] sm:$0xff] %vm722_vm11, %v721_v51 }
 0x1b7   : > { %899 = shalt.err (!%p896_p3)
}
 0x1b8   : > { %822 = dma.vmem_to_hbm [thread:$0]  (%p1005_p5), %s738_s20, 128, %s740_s24, %s725_s25  }
 0x1b9 PF: > { %p828_p4 = scmp.ge.s32.totalorder %s934_s15, 2  ;;  %s751_s5 = sand.u32 1, %s922_s12  }
 0x1ba   : > { %s752_s6 = scalar_lea.sflag [#allocation5], %s751_s5 }
 0x1bb   : > { %p825_p7 = pnand %p828_p4, %p1009_p6 }
 0x1bd   : > { %p826_p8 = pneg %p825_p7 }
 0x1bf   : > { %917 = dma.done.wait (%p826_p8), %s752_s6, 128  }
 0x1c0   : > { %919 = vsyncadd (%p826_p8), %s752_s6, 4294967168  ;;  %p13_p9 = scmp.ge.s32.totalorder %s992_s18, 4   ;;  %s1612_s12 = smov %s926_s13 }
 0x1c1   : > { %s1613_s13 = smov %s930_s14  ;;  %s1614_s14 = smov %s1003_s21 }
 0x1c2   : > { %s1615_s15 = smov %s992_s18  ;;  %15 = sbr.rel (!%p13_p9) target bundleno = 3 (0x3), region = 70 }
 0x1c7   :  { %758 = vsyncpa [#allocation5], 1 }
 0x1c8   :  { %760 = vsyncpa [#allocation5 + $0x1], 1 }

</bundles_post_ra>
